<compile_context>
chip_gen: v6e
topology: v6e:2x2x1
jax: 0.10.0
libtpu: 0.0.40
codegen_flags: <defaults>
</compile_context>

<pallas_src>
import jax
import jax.numpy as jnp
from jax import lax
from jax.experimental import pallas as pl
from jax.experimental.pallas import tpu as pltpu

H1, H2 = 256, 128  # hidden widths of the MLP


def _make_vfunction_kernel(tb, batch, ragged):
    def kernel(x_ref, w1_ref, b1_ref, w2_ref, b2_ref, w3_ref, b3_ref, o_ref):
        x = x_ref[...]
        if ragged:
            # Zero the tail rows of the partial last tile: the unpadded HBM read
            # leaves those VMEM rows undefined. They only influence output rows
            # that are dropped on writeback, but zeroing keeps them finite.
            row = (lax.broadcasted_iota(jnp.int32, (tb, 1), 0)
                   + pl.program_id(0) * tb)
            x = jnp.where(row < batch, x, 0.0)

        # Layer 1: Linear(in_dim -> 256) + ReLU. bf16 operands, f32 acc (MXU).
        h1 = jnp.dot(x.astype(jnp.bfloat16), w1_ref[...],
                     preferred_element_type=jnp.float32)
        h1 = jnp.maximum(h1 + b1_ref[...], 0.0)

        # Layer 2: Linear(256 -> 128) + ReLU.
        h2 = jnp.dot(h1.astype(jnp.bfloat16), w2_ref[...],
                     preferred_element_type=jnp.float32)
        h2 = jnp.maximum(h2 + b2_ref[...], 0.0)

        # Layer 3: Linear(128 -> 1) as an f32 MXU matmul (MXU ext slot has slack;
        # keeps the XLU free). [tb,1] result matches the output block layout.
        out = jnp.dot(h2, w3_ref[...], preferred_element_type=jnp.float32)
        o_ref[...] = (out + b3_ref[...]).astype(o_ref.dtype)

    return kernel


def _round_up(n, m):
    return ((n + m - 1) // m) * m


def vfunction_forward(x, params, tb=4096):
    """x: [B, o_dim + g_dim] float32. Returns [B, 1] float32."""
    w1, b1, w2, b2, w3, b3 = params
    B, in_dim = x.shape

    # Batch-tile selection:
    #   * small B  -> single tile (no point splitting near-free work)
    #   * large B  -> big tiles (amortize per-step pipeline overhead), but at
    #     least two tiles so the ("parallel",) grid axis feeds both v7x TCs.
    if B <= 1024:
        tb = _round_up(B, 128)
    else:
        tb = max(128, min(tb, _round_up(pl.cdiv(B, 2), 128)))
    num_tiles = pl.cdiv(B, tb)
    ragged = (B % tb) != 0

    # bf16 weights for the two large MXU matmuls; layer-3 column + biases in f32.
    w1b = w1.astype(jnp.bfloat16)
    w2b = w2.astype(jnp.bfloat16)

    # Constant index_map -> block stays resident in VMEM across grid steps.
    const = lambda a: pl.BlockSpec(a.shape, lambda i, _nd=a.ndim: (0,) * _nd)

    flops = 2 * B * (in_dim * H1 + H1 * H2 + H2)
    bytes_accessed = (B * (in_dim * 4 + 4)
                      + w1b.size * 2 + w2b.size * 2
                      + (b1.size + b2.size + w3.size + b3.size) * 4)

    out = pl.pallas_call(
        _make_vfunction_kernel(tb, B, ragged),
        out_shape=jax.ShapeDtypeStruct((B, 1), jnp.float32),
        grid=(num_tiles,),
        in_specs=[
            pl.BlockSpec((tb, in_dim), lambda i: (i, 0)),   # x: tiled over batch
            const(w1b), const(b1),                          # weights resident
            const(w2b), const(b2),
            const(w3), const(b3),
        ],
        out_specs=pl.BlockSpec((tb, 1), lambda i: (i, 0)),
        compiler_params=pltpu.CompilerParams(
            dimension_semantics=("parallel",),              # megacore on v7x
            vmem_limit_bytes=48 * 1024 * 1024),             # headroom for TB=4096
        cost_estimate=pl.CostEstimate(
            flops=flops, transcendentals=0, bytes_accessed=bytes_accessed),
    )(x, w1b, b1, w2b, b2, w3, b3)

    return out


def init_params(key, o_dim, g_dim):
    """Deterministic parameter init (PyTorch-style uniform fan-in scaling).

    Weights are stored as [in_features, out_features] (transposed vs. PyTorch)."""
    in_dim = o_dim + g_dim
    dims = [(in_dim, H1), (H1, H2), (H2, 1)]
    params = []
    for i, (fan_in, fan_out) in enumerate(dims):
        kw, kb = jax.random.split(jax.random.fold_in(key, i))
        bound = 1.0 / jnp.sqrt(fan_in)
        w = jax.random.uniform(kw, (fan_in, fan_out), jnp.float32, -bound, bound)
        b = jax.random.uniform(kb, (1, fan_out), jnp.float32, -bound, bound)
        params.extend([w, b])
    return tuple(params)


def vfunction_ref(x, params):
    """Pure-JAX f32 reference for correctness checking."""
    w1, b1, w2, b2, w3, b3 = params
    h1 = jnp.maximum(x @ w1 + b1, 0.0)
    h2 = jnp.maximum(h1 @ w2 + b2, 0.0)
    return h2 @ w3 + b3


if __name__ == "__main__":
    o_dim, g_dim = 10, 6
    batch = 8   # small + non-multiple-of-128 -> exercises the ragged-tile path

    key = jax.random.PRNGKey(0)
    k_params, k_x = jax.random.split(key)
    params = init_params(k_params, o_dim, g_dim)
    x = jax.random.normal(k_x, (batch, o_dim + g_dim), jnp.float32)

    out = jax.block_until_ready(vfunction_forward(x, params))
    ref = vfunction_ref(x, params)

    assert out.shape == (batch, 1), out.shape
    # bf16 operands in layers 1-2 (f32 accumulation) -> relaxed tolerance.
    assert jnp.allclose(out, ref, atol=5e-2, rtol=5e-2), (out, ref)

    print("KERNEL_OK")
</pallas_src>

<mosaic_0001>
module attributes {stable_mosaic.version = 11 : i64} {
  func.func @kernel(%arg0: i32, %arg1: memref<128x16xf32, #tpu.memory_space<vmem>>, %arg2: memref<16x256xbf16, #tpu.memory_space<vmem>>, %arg3: memref<1x256xf32, #tpu.memory_space<vmem>>, %arg4: memref<256x128xbf16, #tpu.memory_space<vmem>>, %arg5: memref<1x128xf32, #tpu.memory_space<vmem>>, %arg6: memref<128x1xf32, #tpu.memory_space<vmem>>, %arg7: memref<1x1xf32, #tpu.memory_space<vmem>>, %arg8: memref<128x1xf32, #tpu.memory_space<vmem>>) attributes {dimension_semantics = [#tpu.dimension_semantics<parallel>], iteration_bounds = array<i64: 1>, scalar_prefetch = 0 : i64, scratch_operands = 0 : i64, tpu.core_type = #tpu.core_type<tc>, window_params = [{transform_indices = @transform_0, window_bounds = array<i64: 128, 16>}, {pipeline_mode = #tpu.pipeline_mode<synchronous>, transform_indices = @transform_1, window_bounds = array<i64: 16, 256>}, {pipeline_mode = #tpu.pipeline_mode<synchronous>, transform_indices = @transform_2, window_bounds = array<i64: 1, 256>}, {pipeline_mode = #tpu.pipeline_mode<synchronous>, transform_indices = @transform_3, window_bounds = array<i64: 256, 128>}, {pipeline_mode = #tpu.pipeline_mode<synchronous>, transform_indices = @transform_4, window_bounds = array<i64: 1, 128>}, {pipeline_mode = #tpu.pipeline_mode<synchronous>, transform_indices = @transform_5, window_bounds = array<i64: 128, 1>}, {pipeline_mode = #tpu.pipeline_mode<synchronous>, transform_indices = @transform_6, window_bounds = array<i64: 1, 1>}, {transform_indices = @transform_7, window_bounds = array<i64: 128, 1>}]} {
    %c0 = arith.constant 0 : index
    %c0_0 = arith.constant 0 : index
    %0 = vector.load %arg1[%c0, %c0_0] : memref<128x16xf32, #tpu.memory_space<vmem>>, vector<128x16xf32>
    %1 = tpu.iota {dimensions = array<i32: 0>} : vector<128x1xi32>
    %c128_i32 = arith.constant 128 : i32
    %2 = arith.muli %arg0, %c128_i32 : i32
    %3 = vector.broadcast %2 : i32 to vector<128x1xi32>
    %4 = arith.addi %1, %3 : vector<128x1xi32>
    %c8_i32 = arith.constant 8 : i32
    %5 = vector.broadcast %c8_i32 : i32 to vector<128x1xi32>
    %6 = arith.cmpi slt, %4, %5 : vector<128x1xi32>
    %cst = arith.constant 0.000000e+00 : f32
    %7 = vector.shape_cast %6 : vector<128x1xi1> to vector<128x1xi1>
    %8 = vector.broadcast %7 : vector<128x1xi1> to vector<128x16xi1>
    %9 = vector.broadcast %cst : f32 to vector<128x16xf32>
    %10 = arith.select %8, %0, %9 : vector<128x16xi1>, vector<128x16xf32>
    %11 = arith.truncf %10 : vector<128x16xf32> to vector<128x16xbf16>
    %c0_1 = arith.constant 0 : index
    %c0_2 = arith.constant 0 : index
    %12 = vector.load %arg2[%c0_1, %c0_2] : memref<16x256xbf16, #tpu.memory_space<vmem>>, vector<16x256xbf16>
    %cst_3 = arith.constant dense<0.000000e+00> : vector<128x256xf32>
    %13 = tpu.matmul %11, %12, %cst_3 {dimension_numbers = #tpu.dot_dimension_numbers<[1], [0], [0], [1], [0, 0, 1, 1], [], []>} : vector<128x16xbf16>, vector<16x256xbf16>, vector<128x256xf32> -> vector<128x256xf32>
    %c0_4 = arith.constant 0 : index
    %c0_5 = arith.constant 0 : index
    %14 = vector.load %arg3[%c0_4, %c0_5] : memref<1x256xf32, #tpu.memory_space<vmem>>, vector<1x256xf32>
    %15 = vector.broadcast %14 : vector<1x256xf32> to vector<128x256xf32>
    %16 = arith.addf %13, %15 : vector<128x256xf32>
    %cst_6 = arith.constant 0.000000e+00 : f32
    %17 = vector.broadcast %cst_6 : f32 to vector<128x256xf32>
    %18 = arith.maximumf %16, %17 : vector<128x256xf32>
    %19 = arith.truncf %18 : vector<128x256xf32> to vector<128x256xbf16>
    %c0_7 = arith.constant 0 : index
    %c0_8 = arith.constant 0 : index
    %20 = vector.load %arg4[%c0_7, %c0_8] : memref<256x128xbf16, #tpu.memory_space<vmem>>, vector<256x128xbf16>
    %cst_9 = arith.constant dense<0.000000e+00> : vector<128x128xf32>
    %21 = tpu.matmul %19, %20, %cst_9 {dimension_numbers = #tpu.dot_dimension_numbers<[1], [0], [0], [1], [0, 0, 1, 1], [], []>} : vector<128x256xbf16>, vector<256x128xbf16>, vector<128x128xf32> -> vector<128x128xf32>
    %c0_10 = arith.constant 0 : index
    %c0_11 = arith.constant 0 : index
    %22 = vector.load %arg5[%c0_10, %c0_11] : memref<1x128xf32, #tpu.memory_space<vmem>>, vector<1x128xf32>
    %23 = vector.broadcast %22 : vector<1x128xf32> to vector<128x128xf32>
    %24 = arith.addf %21, %23 : vector<128x128xf32>
    %cst_12 = arith.constant 0.000000e+00 : f32
    %25 = vector.broadcast %cst_12 : f32 to vector<128x128xf32>
    %26 = arith.maximumf %24, %25 : vector<128x128xf32>
    %c0_13 = arith.constant 0 : index
    %c0_14 = arith.constant 0 : index
    %27 = vector.load %arg6[%c0_13, %c0_14] : memref<128x1xf32, #tpu.memory_space<vmem>>, vector<128x1xf32>
    %cst_15 = arith.constant dense<0.000000e+00> : vector<128x1xf32>
    %28 = tpu.matmul %26, %27, %cst_15 {dimension_numbers = #tpu.dot_dimension_numbers<[1], [0], [0], [1], [0, 0, 1, 1], [], []>} : vector<128x128xf32>, vector<128x1xf32>, vector<128x1xf32> -> vector<128x1xf32>
    %c0_16 = arith.constant 0 : index
    %c0_17 = arith.constant 0 : index
    %29 = vector.load %arg7[%c0_16, %c0_17] : memref<1x1xf32, #tpu.memory_space<vmem>>, vector<1x1xf32>
    %30 = vector.broadcast %29 : vector<1x1xf32> to vector<128x1xf32>
    %31 = arith.addf %28, %30 : vector<128x1xf32>
    %c0_18 = arith.constant 0 : index
    %c0_19 = arith.constant 0 : index
    %32 = vector.load %arg8[%c0_18, %c0_19] : memref<128x1xf32, #tpu.memory_space<vmem>>, vector<128x1xf32>
    tpu.vector_store %arg8[%c0_18, %c0_19], %31 {strides = array<i32>} : memref<128x1xf32, #tpu.memory_space<vmem>>, vector<128x1xf32>,
    return
  }
  func.func @transform_0(%arg0: i32) -> (i32, i32) {
    %c0_i32 = arith.constant 0 : i32
    %c0_i32_0 = arith.constant 0 : i32
    return %arg0, %c0_i32 : i32, i32
  }
  func.func @transform_1(%arg0: i32) -> (i32, i32) {
    %c0_i32 = arith.constant 0 : i32
    %c0_i32_0 = arith.constant 0 : i32
    %c0_i32_1 = arith.constant 0 : i32
    return %c0_i32, %c0_i32_0 : i32, i32
  }
  func.func @transform_2(%arg0: i32) -> (i32, i32) {
    %c0_i32 = arith.constant 0 : i32
    %c0_i32_0 = arith.constant 0 : i32
    %c0_i32_1 = arith.constant 0 : i32
    return %c0_i32, %c0_i32_0 : i32, i32
  }
  func.func @transform_3(%arg0: i32) -> (i32, i32) {
    %c0_i32 = arith.constant 0 : i32
    %c0_i32_0 = arith.constant 0 : i32
    %c0_i32_1 = arith.constant 0 : i32
    return %c0_i32, %c0_i32_0 : i32, i32
  }
  func.func @transform_4(%arg0: i32) -> (i32, i32) {
    %c0_i32 = arith.constant 0 : i32
    %c0_i32_0 = arith.constant 0 : i32
    %c0_i32_1 = arith.constant 0 : i32
    return %c0_i32, %c0_i32_0 : i32, i32
  }
  func.func @transform_5(%arg0: i32) -> (i32, i32) {
    %c0_i32 = arith.constant 0 : i32
    %c0_i32_0 = arith.constant 0 : i32
    %c0_i32_1 = arith.constant 0 : i32
    return %c0_i32, %c0_i32_0 : i32, i32
  }
  func.func @transform_6(%arg0: i32) -> (i32, i32) {
    %c0_i32 = arith.constant 0 : i32
    %c0_i32_0 = arith.constant 0 : i32
    %c0_i32_1 = arith.constant 0 : i32
    return %c0_i32, %c0_i32_0 : i32, i32
  }
  func.func @transform_7(%arg0: i32) -> (i32, i32) {
    %c0_i32 = arith.constant 0 : i32
    %c0_i32_0 = arith.constant 0 : i32
    return %arg0, %c0_i32 : i32, i32
  }
}

</mosaic_0001>

<bundles_post_ra>
// kernel: tpu_custom_call.1
= control target key start
LH: loop header
LB: loop body
LE: loop exit
PB: predicated region body
PF: predicated region fallthrough
CT: control target
= control target key end

     0   :  { %s1322_s0 = inlined_call_operand.vmem [shape: f32[8,16], index: 0, kind: input, shape index: {}]   ;;  %s1323_s1 = inlined_call_operand.hbm [shape: bf16[16,256], index: 1, kind: input, shape index: {}]   ;;  %s1324_s2 = inlined_call_operand.hbm [shape: f32[1,256], index: 2, kind: input, shape index: {}]   ;;  %s1325_s3 = inlined_call_operand.vmem [shape: bf16[256,128], index: 3, kind: input, shape index: {}]   ;;  %s1326_s4 = inlined_call_operand.vmem [shape: f32[1,128], index: 4, kind: input, shape index: {}]   ;;  %s1327_s5 = inlined_call_operand.vmem [shape: f32[128,1], index: 5, kind: input, shape index: {}]   ;;  %s1328_s6 = inlined_call_operand.<no memory space> [shape: f32[1,1], index: 6, kind: input, shape index: {}]   ;;  %s1329_s7 = inlined_call_operand.vmem [shape: f32[8,1], index: 7, kind: output, shape index: {}]  }
   0x1   :  { %v12_v0 = vstv %s1328_s6 }
   0x2   :  { %13 = vst [vmem:[#allocation2] sm:$0x1] %v12_v0 }
   0x3   :  { %14 = vsyncpa [#allocation4], 0 }
   0x4   :  { %15 = vsyncpa [#allocation6], 0  ;;  %s1107_s26 = smov [#allocation3]  }
   0x5   :  { %s23_s27 = sshll.u32 %s1107_s26, 4  ;;  %s24_s27 = int_to_ptr.vmem [resolvable:$true] %s23_s27 }
   0x6   :  { %s1071_s28 = scalar_lea.vmem %s24_s27, 256  ;;  %p1076_p1 = scmp.lt.s32.totalorder %s24_s27, %s24_s27 }
   0x7   :  { %p1072_p0 = scmp.ne.s32.totalorder %s24_s27, %s1071_s28  ;;  %p1077_p2 = scmp.lt.s32.totalorder %s1071_s28, %s1071_s28 }
   0x9   :  { %p1078_p3 = por %p1077_p2, %p1076_p1 }
   0xb   :  { %p1079_p4 = pnand %p1078_p3, %p1072_p0 }
   0xd   :  { %1082 = shalt.err (!%p1079_p4)
}
   0xe   :  { %s1108_s29 = smov 128   ;;  %s1109_s30 = smov 8  }
   0xf   :  { %29 = dma.hbm_to_vmem [thread:$0]  %s1323_s1, 256, %s24_s27, [#allocation4], %s1108_s29, %s1108_s29, %s1109_s30  }
  0x10   :  { %s1110_s6 = smov [#allocation5]  }
  0x11   :  { %s36_s10 = sshll.u32 %s1110_s6, 4  ;;  %s37_s10 = int_to_ptr.vmem [resolvable:$true] %s36_s10 }
  0x12   :  { %s1091_s11 = scalar_lea.vmem %s37_s10, 32  ;;  %p1096_p6 = scmp.lt.s32.totalorder %s37_s10, %s37_s10 }
  0x13   :  { %p1092_p5 = scmp.ne.s32.totalorder %s37_s10, %s1091_s11  ;;  %p1097_p7 = scmp.lt.s32.totalorder %s1091_s11, %s1091_s11 }
  0x15   :  { %p1098_p8 = por %p1097_p7, %p1096_p6 }
  0x17   :  { %p1099_p9 = pnand %p1098_p8, %p1092_p5 }
  0x19   :  { %1102 = shalt.err (!%p1099_p9)
}
  0x1a   :  { %39 = dma.hbm_to_vmem [thread:$0]  %s1324_s2, 32, %s37_s10, [#allocation6]  }
  0x1b   :  { %1103 = dma.done.wait [#allocation4], 256  }
  0x1c   :  { %1104 = vsyncadd [#allocation4], 4294967040 }
  0x1d   :  { %1105 = dma.done.wait [#allocation6], 32  }
  0x1e   :  { %1106 = vsyncadd [#allocation6], 4294967264  ;;  %v1111_v1 = vmov 0   ;;  %v1044_v2 = vld [vmem:[#allocation3 + $0x4] ss:$8 sps:$4 sm:$0xff]   ;;  %v1112_v5 = vmov 0.0   ;;  %v182_v34 = vlaneseq }
  0x1f   :  { %259 = vmatprep.mubr.bf16.mxu0 %v1111_v1  ;;  %v1046_v3 = vld [vmem:[#allocation3] ss:$8 sps:$4 sm:$0xff]   ;;  %241 = vmatprep.subr.bf16.mxu0 %v1044_v2  ;;  %v1047_v7 = vld [vmem:[%s1325_s3 + $0x78] sm:$0xff]   ;;  %vm202_vm0 = vcmask 130048   ;;  %v1049_v9 = vld [vmem:[%s1325_s3 + $0x70] sm:$0xff]   ;;  %v1113_v16 = vmov 0.0|0.0  }
  0x20   :  { %v55_v4 = vld [vmem:[%s1322_s0] sm:$0xff]  ;;  %242 = vmatpush1.bf16.msra.mxu0 %v1046_v3  ;;  %v1048_v8 = vld [vmem:[%s1325_s3 + $0x38] sm:$0xff]   ;;  %885 = vmatprep.subr.bf16.mxu1 %v1047_v7  ;;  %v1050_v10 = vld [vmem:[%s1325_s3 + $0x30] sm:$0xff]   ;;  %v183_v35 = vshrl.u32 %v182_v34, 7  ;;  %vm804_vm1 = vcmask 7168  }
  0x21   :  { %v170_v6 = vpack.c.bf16 %v1112_v5, %v55_v4  ;;  %886 = vmatpush3.bf16.msra.mxu1 %v1048_v8  ;;  %v1051_v11 = vld [vmem:[%s1325_s3 + $0x68] sm:$0xff]   ;;  %v1053_v13 = vld [vmem:[%s1325_s3 + $0x60] sm:$0xff]   ;;  %v1055_v15 = vld [vmem:[%s1325_s3 + $0x58] sm:$0xff]  }
  0x22   :  { %887 = vmatprep.subr.bf16.mxu1 %v1049_v9  ;;  %v1052_v12 = vld [vmem:[%s1325_s3 + $0x28] sm:$0xff]   ;;  %v1054_v14 = vld [vmem:[%s1325_s3 + $0x20] sm:$0xff]   ;;  %v1056_v17 = vld [vmem:[%s1325_s3 + $0x18] sm:$0xff]   ;;  %v188_v36 = vsub.s32 1, %v183_v35  ;;  %v184_v37 = vsub.s32 0, %v183_v35 }
  0x23   :  { %866 = vmatmul.mubr.msk.bf16.vlgmr.msra.gmra.mxu0 %vm202_vm0, %v170_v6  ;;  %v1057_v18 = vld [vmem:[%s1325_s3 + $0x50] sm:$0xff]   ;;  %v1059_v20 = vld [vmem:[%s1325_s3 + $0x48] sm:$0xff]   ;;  %v1061_v22 = vld [vmem:[%s1325_s3 + $0x40] sm:$0xff]  }
  0x24   :  { %269 = vmatprep.mubr.bf16.mxu0 %v1111_v1  ;;  %v1058_v19 = vld [vmem:[%s1325_s3 + $0x10] sm:$0xff]   ;;  %v1060_v21 = vld [vmem:[%s1325_s3 + $0x8] sm:$0xff]   ;;  %v1062_v23 = vld [vmem:[%s1325_s3] sm:$0xff]  }
  0x25   :  { %888 = vmatpush3.bf16.msra.mxu1 %v1050_v10  ;;  %v651_v24 = vld [vmem:[%s1327_s5 + $0x78] sm:$0xff]  ;;  %v650_v25 = vld [vmem:[%s1327_s5 + $0x70] sm:$0xff]  ;;  %v649_v26 = vld [vmem:[%s1327_s5 + $0x68] sm:$0xff] }
  0x26   :  { %889 = vmatprep.subr.bf16.mxu1 %v1051_v11  ;;  %981 = vmatprep.subr.mxu0 %v651_v24  ;;  %v648_v27 = vld [vmem:[%s1327_s5 + $0x60] sm:$0xff]  ;;  %v647_v28 = vld [vmem:[%s1327_s5 + $0x58] sm:$0xff]  ;;  %v646_v29 = vld [vmem:[%s1327_s5 + $0x50] sm:$0xff] }
  0x27   :  { %982 = vmatpush3.msra.mxu0 %v651_v24  ;;  %v645_v30 = vld [vmem:[%s1327_s5 + $0x48] sm:$0xff]  ;;  %v644_v31 = vld [vmem:[%s1327_s5 + $0x40] sm:$0xff]  ;;  %v643_v32 = vld [vmem:[%s1327_s5 + $0x38] sm:$0xff] }
  0x28   :  { %983 = vmatprep.subr.mxu0 %v650_v25  ;;  %v642_v33 = vld [vmem:[%s1327_s5 + $0x30] sm:$0xff] }
  0x29   :  { %890 = vmatpush3.bf16.msra.mxu1 %v1052_v12  ;;  %984 = vmatpush3.msra.mxu0 %v650_v25  ;;  %v180_v38 = vld [vmem:[#allocation5] sm:$0x3] }
  0x2a   :  { %891 = vmatprep.subr.bf16.mxu1 %v1053_v13  ;;  %985 = vmatprep.subr.mxu0 %v649_v26  ;;  %v1244_v40 = vrot.slane %v180_v38, %v188_v36  ;;  %v1246_v41 = vrot.slane %v180_v38, %v184_v37 }
  0x2b   :  { %270 = vmatmul.mubr.bf16.gmra.mxu0 %v1113_v16 }
  0x2c   :  { %279 = vmatprep.mubr.bf16.mxu0 %v1111_v1  ;;  %986 = vmatpush3.msra.mxu0 %v649_v26 }
  0x2d   :  { %892 = vmatpush3.bf16.msra.mxu1 %v1054_v14  ;;  %987 = vmatprep.subr.mxu0 %v648_v27 }
  0x2e   :  { %893 = vmatprep.subr.bf16.mxu1 %v1055_v15  ;;  %988 = vmatpush3.msra.mxu0 %v648_v27 }
  0x2f   :  { %989 = vmatprep.subr.mxu0 %v647_v28 }
  0x30   :  { %990 = vmatpush3.msra.mxu0 %v647_v28 }
  0x31   :  { %894 = vmatpush3.bf16.msra.mxu1 %v1056_v17  ;;  %991 = vmatprep.subr.mxu0 %v646_v29 }
  0x32   :  { %895 = vmatprep.subr.bf16.mxu1 %v1057_v18  ;;  %992 = vmatpush3.msra.mxu0 %v646_v29 }
  0x33   :  { %280 = vmatmul.mubr.bf16.gmra.mxu0 %v1113_v16  ;;  %993 = vmatprep.subr.mxu0 %v645_v30 }
  0x34   :  { %289 = vmatprep.mubr.bf16.mxu0 %v1111_v1  ;;  %994 = vmatpush3.msra.mxu0 %v645_v30 }
  0x35   :  { %896 = vmatpush3.bf16.msra.mxu1 %v1058_v19  ;;  %995 = vmatprep.subr.mxu0 %v644_v31 }
  0x36   :  { %897 = vmatprep.subr.bf16.mxu1 %v1059_v20  ;;  %996 = vmatpush3.msra.mxu0 %v644_v31 }
  0x37   :  { %997 = vmatprep.subr.mxu0 %v643_v32 }
  0x38   :  { %998 = vmatpush3.msra.mxu0 %v643_v32 }
  0x39   :  { %898 = vmatpush3.bf16.msra.mxu1 %v1060_v21  ;;  %999 = vmatprep.subr.mxu0 %v642_v33 }
  0x3a   :  { %899 = vmatprep.subr.bf16.mxu1 %v1061_v22  ;;  %1000 = vmatpush3.msra.mxu0 %v642_v33 }
  0x3b   :  { %290 = vmatmul.mubr.bf16.gmra.mxu0 %v1113_v16 }
  0x3c   :  { %299 = vmatprep.mubr.bf16.mxu0 %v1111_v1 }
  0x3d   :  { %900 = vmatpush3.bf16.msra.mxu1 %v1062_v23 }
  0x43   :  { %300 = vmatmul.mubr.bf16.gmra.mxu0 %v1113_v16 }
  0x44   :  { %309 = vmatprep.mubr.bf16.mxu0 %v1111_v1 }
  0x4b   :  { %310 = vmatmul.mubr.bf16.gmra.mxu0 %v1113_v16 }
  0x4c   :  { %319 = vmatprep.mubr.bf16.mxu0 %v1111_v1 }
  0x53   :  { %320 = vmatmul.mubr.bf16.gmra.mxu0 %v1113_v16 }
  0x54   :  { %329 = vmatprep.mubr.bf16.mxu0 %v1111_v1 }
  0x5b   :  { %330 = vmatmul.mubr.bf16.gmra.mxu0 %v1113_v16 }
  0xe3   :  { %v261_v39 = vpop.f32.mrf.mxu0 }
  0xe4   :  { %v262_v46 = vadd.f32 %v261_v39, %v1246_v41 }
  0xe5   :  { %v263_v42 = vpop.f32.mrf.mxu0 }
  0xe6   :  { %v264_v44 = vadd.f32 %v263_v42, %v1244_v40  ;;  %v340_v53 = vmax.f32 %v262_v46, 0.0 }
  0xe7   :  { %v265_v43 = vpop.f32.mrf.mxu0 }
  0xe8   :  { %v266_v45 = vadd.f32 %v265_v43, %v1246_v41  ;;  %v341_v51 = vmax.f32 %v264_v44, 0.0 }
  0xe9   :  { %v267_v47 = vpop.f32.mrf.mxu0 }
  0xea   :  { %v268_v48 = vadd.f32 %v267_v47, %v1244_v40  ;;  %v342_v49 = vmax.f32 %v266_v45, 0.0 }
  0xeb   :  { %v271_v50 = vpop.f32.mrf.mxu0 }
  0xec   :  { %v343_v52 = vmax.f32 %v268_v48, 0.0  ;;  %v372_v56 = vpack.c.bf16 %v342_v49, %v340_v53  ;;  %v272_v60 = vadd.f32 %v271_v50, %v1246_v41 }
  0xed   :  { %v273_v54 = vpop.f32.mrf.mxu0 }
  0xee   :  { %v373_v55 = vpack.c.bf16 %v343_v52, %v341_v51  ;;  %v274_v58 = vadd.f32 %v273_v54, %v1244_v40  ;;  %v344_v3 = vmax.f32 %v272_v60, 0.0 }
  0xef   :  { %v275_v57 = vpop.f32.mrf.mxu0 }
  0xf0   :  { %v276_v59 = vadd.f32 %v275_v57, %v1246_v41  ;;  %555 = vmatprep.mubr.bf16.mxu1 %v373_v55  ;;  %v345_v1 = vmax.f32 %v274_v58, 0.0 }
  0xf1   :  { %v277_v61 = vpop.f32.mrf.mxu0  ;;  %556 = vmatmul.mubr.bf16.vlgmr.msra.gmra.mxu1 %v372_v56 }
  0xf2   :  { %v278_v62 = vadd.f32 %v277_v61, %v1244_v40  ;;  %v346_v63 = vmax.f32 %v276_v59, 0.0 }
  0xf3   :  { %v281_v0 = vpop.f32.mrf.mxu0 }
  0xf4   :  { %v347_v2 = vmax.f32 %v278_v62, 0.0  ;;  %v374_v6 = vpack.c.bf16 %v346_v63, %v344_v3  ;;  %v282_v10 = vadd.f32 %v281_v0, %v1246_v41 }
  0xf5   :  { %v283_v4 = vpop.f32.mrf.mxu0 }
  0xf6   :  { %v375_v5 = vpack.c.bf16 %v347_v2, %v345_v1  ;;  %v284_v8 = vadd.f32 %v283_v4, %v1244_v40  ;;  %v348_v17 = vmax.f32 %v282_v10, 0.0 }
  0xf7   :  { %v285_v7 = vpop.f32.mrf.mxu0 }
  0xf8   :  { %v286_v9 = vadd.f32 %v285_v7, %v1246_v41  ;;  %563 = vmatprep.mubr.bf16.mxu1 %v375_v5  ;;  %v349_v15 = vmax.f32 %v284_v8, 0.0 }
  0xf9   :  { %v287_v11 = vpop.f32.mrf.mxu0  ;;  %564 = vmatmul.mubr.bf16.gmra.mxu1 %v374_v6 }
  0xfa   :  { %v288_v12 = vadd.f32 %v287_v11, %v1244_v40  ;;  %v350_v13 = vmax.f32 %v286_v9, 0.0 }
  0xfb   :  { %v291_v14 = vpop.f32.mrf.mxu0 }
  0xfc   :  { %v351_v16 = vmax.f32 %v288_v12, 0.0  ;;  %v376_v20 = vpack.c.bf16 %v350_v13, %v348_v17  ;;  %v292_v24 = vadd.f32 %v291_v14, %v1246_v41 }
  0xfd   :  { %v293_v18 = vpop.f32.mrf.mxu0 }
  0xfe   :  { %v377_v19 = vpack.c.bf16 %v351_v16, %v349_v15  ;;  %v294_v22 = vadd.f32 %v293_v18, %v1244_v40  ;;  %v352_v31 = vmax.f32 %v292_v24, 0.0 }
  0xff   :  { %v295_v21 = vpop.f32.mrf.mxu0 }
 0x100   :  { %v296_v23 = vadd.f32 %v295_v21, %v1246_v41  ;;  %571 = vmatprep.mubr.bf16.mxu1 %v377_v19  ;;  %v353_v29 = vmax.f32 %v294_v22, 0.0 }
 0x101   :  { %v297_v25 = vpop.f32.mrf.mxu0  ;;  %572 = vmatmul.mubr.bf16.gmra.mxu1 %v376_v20 }
 0x102   :  { %v298_v26 = vadd.f32 %v297_v25, %v1244_v40  ;;  %v354_v27 = vmax.f32 %v296_v23, 0.0 }
 0x103   :  { %v301_v28 = vpop.f32.mrf.mxu0 }
 0x104   :  { %v355_v30 = vmax.f32 %v298_v26, 0.0  ;;  %v378_v34 = vpack.c.bf16 %v354_v27, %v352_v31  ;;  %v302_v38 = vadd.f32 %v301_v28, %v1246_v41  ;;  %v641_v27 = vld [vmem:[%s1327_s5 + $0x28] sm:$0xff]  ;;  %v638_v28 = vld [vmem:[%s1327_s5 + $0x10] sm:$0xff] }
 0x105   :  { %v303_v32 = vpop.f32.mrf.mxu0  ;;  %1001 = vmatprep.subr.mxu0 %v641_v27 }
 0x106   :  { %v379_v33 = vpack.c.bf16 %v355_v30, %v353_v29  ;;  %v304_v36 = vadd.f32 %v303_v32, %v1244_v40  ;;  %v356_v47 = vmax.f32 %v302_v38, 0.0  ;;  %1002 = vmatpush3.msra.mxu0 %v641_v27  ;;  %v637_v29 = vld [vmem:[%s1327_s5 + $0x8] sm:$0xff]  ;;  %v636_v30 = vld [vmem:[%s1327_s5] sm:$0xff] }
 0x107   :  { %v305_v35 = vpop.f32.mrf.mxu0  ;;  %v1301_v32 = vld [vmem:[%s1326_s4] ss:$0 sm:$0xff] }
 0x108   :  { %v306_v37 = vadd.f32 %v305_v35, %v1246_v41  ;;  %579 = vmatprep.mubr.bf16.mxu1 %v379_v33  ;;  %v357_v45 = vmax.f32 %v304_v36, 0.0 }
 0x109   :  { %v307_v39 = vpop.f32.mrf.mxu0  ;;  %580 = vmatmul.mubr.bf16.gmra.mxu1 %v378_v34 }
 0x10a   :  { %v308_v42 = vadd.f32 %v307_v39, %v1244_v40  ;;  %v358_v43 = vmax.f32 %v306_v37, 0.0 }
 0x10b   :  { %v311_v44 = vpop.f32.mrf.mxu0 }
 0x10c   :  { %v359_v46 = vmax.f32 %v308_v42, 0.0  ;;  %v380_v50 = vpack.c.bf16 %v358_v43, %v356_v47  ;;  %v312_v54 = vadd.f32 %v311_v44, %v1246_v41 }
 0x10d   :  { %v313_v48 = vpop.f32.mrf.mxu0 }
 0x10e   :  { %v381_v49 = vpack.c.bf16 %v359_v46, %v357_v45  ;;  %v314_v52 = vadd.f32 %v313_v48, %v1244_v40  ;;  %v360_v61 = vmax.f32 %v312_v54, 0.0 }
 0x10f   :  { %v315_v51 = vpop.f32.mrf.mxu0 }
 0x110   :  { %v316_v53 = vadd.f32 %v315_v51, %v1246_v41  ;;  %587 = vmatprep.mubr.bf16.mxu1 %v381_v49  ;;  %v361_v59 = vmax.f32 %v314_v52, 0.0 }
 0x111   :  { %v317_v55 = vpop.f32.mrf.mxu0  ;;  %588 = vmatmul.mubr.bf16.gmra.mxu1 %v380_v50 }
 0x112   :  { %v318_v56 = vadd.f32 %v317_v55, %v1244_v40  ;;  %v362_v57 = vmax.f32 %v316_v53, 0.0 }
 0x113   :  { %v321_v58 = vpop.f32.mrf.mxu0 }
 0x114   :  { %v363_v60 = vmax.f32 %v318_v56, 0.0  ;;  %v382_v0 = vpack.c.bf16 %v362_v57, %v360_v61  ;;  %v322_v4 = vadd.f32 %v321_v58, %v1246_v41 }
 0x115   :  { %v323_v62 = vpop.f32.mrf.mxu0 }
 0x116   :  { %v383_v63 = vpack.c.bf16 %v363_v60, %v361_v59  ;;  %v324_v2 = vadd.f32 %v323_v62, %v1244_v40  ;;  %v364_v11 = vmax.f32 %v322_v4, 0.0 }
 0x117   :  { %v325_v1 = vpop.f32.mrf.mxu0 }
 0x118   :  { %v326_v3 = vadd.f32 %v325_v1, %v1246_v41  ;;  %595 = vmatprep.mubr.bf16.mxu1 %v383_v63  ;;  %v365_v9 = vmax.f32 %v324_v2, 0.0 }
 0x119   :  { %v327_v5 = vpop.f32.mrf.mxu0  ;;  %596 = vmatmul.mubr.bf16.gmra.mxu1 %v382_v0 }
 0x11a   :  { %v328_v6 = vadd.f32 %v327_v5, %v1244_v40  ;;  %v366_v7 = vmax.f32 %v326_v3, 0.0 }
 0x11b   :  { %v331_v8 = vpop.f32.mrf.mxu0 }
 0x11c   :  { %v367_v10 = vmax.f32 %v328_v6, 0.0  ;;  %v384_v14 = vpack.c.bf16 %v366_v7, %v364_v11  ;;  %v332_v18 = vadd.f32 %v331_v8, %v1246_v41 }
 0x11d   :  { %v333_v12 = vpop.f32.mrf.mxu0 }
 0x11e   :  { %v385_v13 = vpack.c.bf16 %v367_v10, %v365_v9  ;;  %v334_v16 = vadd.f32 %v333_v12, %v1244_v40  ;;  %v368_v24 = vmax.f32 %v332_v18, 0.0 }
 0x11f   :  { %v335_v15 = vpop.f32.mrf.mxu0 }
 0x120   :  { %v336_v17 = vadd.f32 %v335_v15, %v1246_v41  ;;  %603 = vmatprep.mubr.bf16.mxu1 %v385_v13  ;;  %v369_v22 = vmax.f32 %v334_v16, 0.0  ;;  %v640_v41 = vld [vmem:[%s1327_s5 + $0x20] sm:$0xff] }
 0x121   :  { %v337_v19 = vpop.f32.mrf.mxu0  ;;  %604 = vmatmul.mubr.bf16.gmra.mxu1 %v384_v14  ;;  %1003 = vmatprep.subr.mxu0 %v640_v41 }
 0x122   :  { %v338_v20 = vadd.f32 %v337_v19, %v1244_v40  ;;  %v370_v21 = vmax.f32 %v336_v17, 0.0  ;;  %1004 = vmatpush3.msra.mxu0 %v640_v41  ;;  %v639_v40 = vld [vmem:[%s1327_s5 + $0x18] sm:$0xff] }
 0x123   :  { %1005 = vmatprep.subr.mxu0 %v639_v40 }
 0x124   :  { %v371_v23 = vmax.f32 %v338_v20, 0.0  ;;  %v386_v26 = vpack.c.bf16 %v370_v21, %v368_v24  ;;  %1006 = vmatpush3.msra.mxu0 %v639_v40 }
 0x125   :  { %1007 = vmatprep.subr.mxu0 %v638_v28 }
 0x126   :  { %v387_v25 = vpack.c.bf16 %v371_v23, %v369_v22  ;;  %1008 = vmatpush3.msra.mxu0 %v638_v28 }
 0x127   :  { %1009 = vmatprep.subr.mxu0 %v637_v29 }
 0x128   :  { %611 = vmatprep.mubr.bf16.mxu1 %v387_v25  ;;  %1010 = vmatpush3.msra.mxu0 %v637_v29 }
 0x129   :  { %612 = vmatmul.mubr.bf16.gmra.mxu1 %v386_v26  ;;  %1011 = vmatprep.subr.mxu0 %v636_v30 }
 0x12a   :  { %1012 = vmatpush3.msra.mxu0 %v636_v30 }
 0x1b1   :  { %v901_v31 = vpop.f32.mrf.mxu1 }
 0x1b3   :  { %v902_v33 = vpop.f32.mrf.mxu1 }
 0x1b4   :  { %v903_v34 = vadd.f32 %v902_v33, %v901_v31 }
 0x1b5   :  { %v904_v35 = vpop.f32.mrf.mxu1 }
 0x1b6   :  { %v558_v36 = vadd.f32 %v903_v34, %v1301_v32 }
 0x1b7   :  { %v905_v37 = vpop.f32.mrf.mxu1 }
 0x1b8   :  { %v620_v38 = vmax.f32 %v558_v36, 0.0  ;;  %v906_v39 = vadd.f32 %v905_v37, %v904_v35 }
 0x1b9   :  { %v907_v42 = vpop.f32.mrf.mxu1 }
 0x1ba   :  { %v561_v43 = vadd.f32 %v906_v39, %v1301_v32  ;;  %1013 = vmatprep.mubr.f32.mxu0 %v620_v38 }
 0x1bb   :  { %v908_v44 = vpop.f32.mrf.mxu1 }
 0x1bc   :  { %v621_v45 = vmax.f32 %v561_v43, 0.0  ;;  %v909_v46 = vadd.f32 %v908_v44, %v907_v42 }
 0x1bd   :  { %v910_v47 = vpop.f32.mrf.mxu1 }
 0x1be   :  { %v566_v48 = vadd.f32 %v909_v46, %v1301_v32  ;;  %1014 = vmatmul.mubr.f32.vlgmr.msra.gmra.mxu0 %v621_v45 }
 0x1bf   :  { %v911_v49 = vpop.f32.mrf.mxu1 }
 0x1c0   :  { %v622_v50 = vmax.f32 %v566_v48, 0.0  ;;  %v912_v51 = vadd.f32 %v911_v49, %v910_v47 }
 0x1c1   :  { %v913_v52 = vpop.f32.mrf.mxu1 }
 0x1c2   :  { %v569_v53 = vadd.f32 %v912_v51, %v1301_v32  ;;  %1016 = vmatprep.mubr.f32.mxu0 %v622_v50  ;;  %v884_v51 = vld [vmem:[#allocation2] ss:$0 sm:$0xff] }
 0x1c3   :  { %v914_v54 = vpop.f32.mrf.mxu1 }
 0x1c4   :  { %v623_v55 = vmax.f32 %v569_v53, 0.0  ;;  %v915_v56 = vadd.f32 %v914_v54, %v913_v52 }
 0x1c5   :  { %v916_v57 = vpop.f32.mrf.mxu1 }
 0x1c6   :  { %v574_v58 = vadd.f32 %v915_v56, %v1301_v32  ;;  %1017 = vmatmul.mubr.f32.gmra.mxu0 %v623_v55 }
 0x1c7   :  { %v917_v59 = vpop.f32.mrf.mxu1 }
 0x1c8   :  { %v624_v60 = vmax.f32 %v574_v58, 0.0  ;;  %v918_v61 = vadd.f32 %v917_v59, %v916_v57 }
 0x1c9   :  { %v919_v62 = vpop.f32.mrf.mxu1 }
 0x1ca   :  { %v577_v63 = vadd.f32 %v918_v61, %v1301_v32  ;;  %1019 = vmatprep.mubr.f32.mxu0 %v624_v60 }
 0x1cb   :  { %v920_v0 = vpop.f32.mrf.mxu1 }
 0x1cc   :  { %v625_v1 = vmax.f32 %v577_v63, 0.0  ;;  %v921_v2 = vadd.f32 %v920_v0, %v919_v62 }
 0x1cd   :  { %v922_v3 = vpop.f32.mrf.mxu1 }
 0x1ce   :  { %v582_v4 = vadd.f32 %v921_v2, %v1301_v32  ;;  %1020 = vmatmul.mubr.f32.gmra.mxu0 %v625_v1 }
 0x1cf   :  { %v923_v5 = vpop.f32.mrf.mxu1 }
 0x1d0   :  { %v626_v6 = vmax.f32 %v582_v4, 0.0  ;;  %v924_v7 = vadd.f32 %v923_v5, %v922_v3 }
 0x1d1   :  { %v925_v8 = vpop.f32.mrf.mxu1 }
 0x1d2   :  { %v585_v9 = vadd.f32 %v924_v7, %v1301_v32  ;;  %1022 = vmatprep.mubr.f32.mxu0 %v626_v6 }
 0x1d3   :  { %v926_v10 = vpop.f32.mrf.mxu1 }
 0x1d4   :  { %v627_v11 = vmax.f32 %v585_v9, 0.0  ;;  %v927_v12 = vadd.f32 %v926_v10, %v925_v8 }
 0x1d5   :  { %v928_v13 = vpop.f32.mrf.mxu1 }
 0x1d6   :  { %v590_v14 = vadd.f32 %v927_v12, %v1301_v32  ;;  %1023 = vmatmul.mubr.f32.gmra.mxu0 %v627_v11 }
 0x1d7   :  { %v929_v15 = vpop.f32.mrf.mxu1 }
 0x1d8   :  { %v628_v16 = vmax.f32 %v590_v14, 0.0  ;;  %v930_v17 = vadd.f32 %v929_v15, %v928_v13 }
 0x1d9   :  { %v931_v18 = vpop.f32.mrf.mxu1 }
 0x1da   :  { %v593_v19 = vadd.f32 %v930_v17, %v1301_v32  ;;  %1025 = vmatprep.mubr.f32.mxu0 %v628_v16 }
 0x1db   :  { %v932_v20 = vpop.f32.mrf.mxu1 }
 0x1dc   :  { %v629_v21 = vmax.f32 %v593_v19, 0.0  ;;  %v933_v22 = vadd.f32 %v932_v20, %v931_v18 }
 0x1dd   :  { %v934_v23 = vpop.f32.mrf.mxu1 }
 0x1de   :  { %v598_v24 = vadd.f32 %v933_v22, %v1301_v32  ;;  %1026 = vmatmul.mubr.f32.gmra.mxu0 %v629_v21 }
 0x1df   :  { %v935_v25 = vpop.f32.mrf.mxu1 }
 0x1e0   :  { %v630_v26 = vmax.f32 %v598_v24, 0.0  ;;  %v936_v27 = vadd.f32 %v935_v25, %v934_v23 }
 0x1e1   :  { %v937_v41 = vpop.f32.mrf.mxu1 }
 0x1e2   :  { %v601_v40 = vadd.f32 %v936_v27, %v1301_v32  ;;  %1028 = vmatprep.mubr.f32.mxu0 %v630_v26 }
 0x1e3   :  { %v938_v28 = vpop.f32.mrf.mxu1 }
 0x1e4   :  { %v631_v29 = vmax.f32 %v601_v40, 0.0  ;;  %v939_v30 = vadd.f32 %v938_v28, %v937_v41 }
 0x1e5   :  { %v940_v31 = vpop.f32.mrf.mxu1 }
 0x1e6   :  { %v606_v33 = vadd.f32 %v939_v30, %v1301_v32  ;;  %1029 = vmatmul.mubr.f32.gmra.mxu0 %v631_v29 }
 0x1e7   :  { %v941_v34 = vpop.f32.mrf.mxu1 }
 0x1e8   :  { %v632_v35 = vmax.f32 %v606_v33, 0.0  ;;  %v942_v36 = vadd.f32 %v941_v34, %v940_v31 }
 0x1e9   :  { %v943_v37 = vpop.f32.mrf.mxu1 }
 0x1ea   :  { %v609_v38 = vadd.f32 %v942_v36, %v1301_v32  ;;  %1031 = vmatprep.mubr.f32.mxu0 %v632_v35 }
 0x1eb   :  { %v944_v39 = vpop.f32.mrf.mxu1 }
 0x1ec   :  { %v633_v42 = vmax.f32 %v609_v38, 0.0  ;;  %v945_v43 = vadd.f32 %v944_v39, %v943_v37 }
 0x1ed   :  { %v946_v44 = vpop.f32.mrf.mxu1 }
 0x1ee   :  { %v614_v45 = vadd.f32 %v945_v43, %v1301_v32  ;;  %1032 = vmatmul.mubr.f32.gmra.mxu0 %v633_v42 }
 0x1ef   :  { %v947_v46 = vpop.f32.mrf.mxu1 }
 0x1f0   :  { %v634_v47 = vmax.f32 %v614_v45, 0.0  ;;  %v948_v48 = vadd.f32 %v947_v46, %v946_v44 }
 0x1f2   :  { %v617_v49 = vadd.f32 %v948_v48, %v1301_v32  ;;  %1034 = vmatprep.mubr.f32.mxu0 %v634_v47 }
 0x1f4   :  { %v635_v50 = vmax.f32 %v617_v49, 0.0 }
 0x1f6   :  { %1035 = vmatmul.mubr.f32.gmra.mxu0 %v635_v50 }
 0x27e   :  { %v1015_v52 = vpop.f32.mrf.mxu0 }
 0x280   :  { %v725_v53 = vpop.f32.mrf.mxu0 }
 0x281   :  { %v726_v54 = vadd.f32 %v884_v51, %v725_v53 }
 0x283   :  { %805 = vst.msk [vmem:[#allocation7] sm:$0xff] %vm804_vm1, %v726_v54 }
 0x286   :  { %v1018_v55 = vpop.f32.mrf.mxu0 }
 0x288   :  { %v735_v56 = vpop.f32.mrf.mxu0 }
 0x28a   :  { %v851_v57 = vld [vmem:[#allocation7] sm:$0xff] }
 0x28b   :  { %852 = vst [vmem:[%s1329_s7] sm:$0xff] %v851_v57 }
 0x28e   :  { %v1021_v58 = vpop.f32.mrf.mxu0 }
 0x290   :  { %v745_v59 = vpop.f32.mrf.mxu0 }
 0x296   :  { %v1024_v60 = vpop.f32.mrf.mxu0 }
 0x298   :  { %v755_v32 = vpop.f32.mrf.mxu0 }
 0x29e   :  { %v1027_v61 = vpop.f32.mrf.mxu0 }
 0x2a0   :  { %v765_v62 = vpop.f32.mrf.mxu0 }
 0x2a6   :  { %v1030_v63 = vpop.f32.mrf.mxu0 }
 0x2a8   :  { %v775_v0 = vpop.f32.mrf.mxu0 }
 0x2ae   :  { %v1033_v1 = vpop.f32.mrf.mxu0 }
 0x2b0   :  { %v785_v2 = vpop.f32.mrf.mxu0 }
 0x2b6   :  { %v1036_v3 = vpop.f32.mrf.mxu0 }
 0x2b8   :  { %v795_v4 = vpop.f32.mrf.mxu0 }
 0x2b9   :  { %858 = vsyncpa [#allocation4], 1 }
 0x2ba   :  { %859 = vsyncpa [#allocation6], 1 }

</bundles_post_ra>
